<compile_context>
chip_gen: v7x
topology: tpu7x:2x2x1
jax: 0.10.0
libtpu: 0.0.40
codegen_flags: <defaults>
</compile_context>

<pallas_src>
import jax
import jax.numpy as jnp
from jax import lax
from jax.experimental import pallas as pl
from jax.experimental.pallas import tpu as pltpu

HID_PAD = 128        # fc hidden width padded 100 -> 128 (lane-dense)
BOX_PAD = 640        # box featurespace padded 600 -> 640 (K multiple of 128)


def _wfc_kernel(cnn_ref, weff_ref, beff_ref, w2c_ref, b2c_ref,
                box_ref, w1b_ref, b1b_ref, w2b_ref, b2b_ref,
                w3_ref, b3_ref, cnnp_ref, basp_ref, out_ref):
    """One batch tile of the head.  Matmul operands are bf16 (or f32 when the
    exact path is requested); accumulation and elementwise math stay f32."""
    mm = w2c_ref.dtype

    # --- cnn branch: Conv2d(3x3,pad=1)+flatten+fc_cnn[0] pre-folded into one
    #     (Din, HID_PAD) weight, so the whole front-end is a single MXU dot.
    h = jnp.dot(cnn_ref[...], weff_ref[...], preferred_element_type=jnp.float32)
    h = jnp.maximum(h + beff_ref[...], 0.0)
    # Dropout is identity here: the PyTorch forward runs the head in eval mode.
    # TODO(synk): uncertainty=True (MC-dropout) would need pltpu.prng_* masks.
    h = jnp.dot(h.astype(mm), w2c_ref[...], preferred_element_type=jnp.float32)
    h = jnp.maximum(h + b2c_ref[...], 0.0)

    # --- box branch: fc_classifier MLP on the flattened box feature space.
    g = jnp.dot(box_ref[...], w1b_ref[...], preferred_element_type=jnp.float32)
    g = jnp.maximum(g + b1b_ref[...], 0.0)
    g = jnp.dot(g.astype(mm), w2b_ref[...], preferred_element_type=jnp.float32)
    g = jnp.maximum(g + b2b_ref[...], 0.0)

    # --- combined final layer: block-diagonal (2*HID_PAD, 2) weight gives
    #     [weight_cnn, weight_box] in a single dot.
    hg = jnp.concatenate([h, g], axis=1).astype(mm)
    wcwb = jnp.dot(hg, w3_ref[...], preferred_element_type=jnp.float32) + b3_ref[...]

    # --- weighted combination of the two detached sub-model predictions.
    out_ref[...] = wcwb[:, 0:1] * cnnp_ref[...] + wcwb[:, 1:2] * basp_ref[...]


def _round_up(x, m):
    return (x + m - 1) // m * m


def wfc_forward(params, cnn_fs_nchw, cnn_pred, box_fs, basic_pred,
                *, use_bf16_matmul=True):
    """Pallas forward.  Inputs follow PyTorch conventions (NCHW feature map,
    (out, in) Linear weights, OIHW conv weights)."""
    B, Cin, H, W = cnn_fs_nchw.shape
    Cout = params["conv_w"].shape[0]
    HID = params["fc_cnn_b1"].shape[0]
    Din = Cin * H * W
    mmdt = jnp.bfloat16 if use_bf16_matmul else jnp.float32

    # ---- Fold Conv2d(3x3,pad=1) -> flatten(NCHW) -> Linear(first_fc, HID)
    #      into one (Din, HID) weight + (HID,) bias.  The composition is a
    #      single linear map; probe it with the identity basis (pure XLA in
    #      the wrapper, done once per weight set - not in the kernel).
    eye = jnp.eye(Din, dtype=jnp.float32).reshape(Din, Cin, H, W)
    conv_eye = lax.conv_general_dilated(
        eye, params["conv_w"], window_strides=(1, 1),
        padding=((1, 1), (1, 1)),
        dimension_numbers=("NCHW", "OIHW", "NCHW"))                 # (Din,Cout,H,W)
    w_eff = conv_eye.reshape(Din, Cout * H * W) @ params["fc_cnn_w1"].T   # (Din,HID)
    conv_bias_flat = jnp.broadcast_to(
        params["conv_b"][:, None, None], (Cout, H, W)).reshape(-1)
    b_eff = params["fc_cnn_b1"] + conv_bias_flat @ params["fc_cnn_w1"].T  # (HID,)

    # ---- lane-dense zero padding of weights / biases ----
    def pad2(w, rows, cols, dtype):
        return jnp.pad(w, ((0, rows - w.shape[0]),
                           (0, cols - w.shape[1]))).astype(dtype)

    def padb(b, cols):                      # bias -> (1, cols), stays f32
        return jnp.pad(b[None, :], ((0, 0), (0, cols - b.shape[0])))

    w_eff_p = pad2(w_eff, Din, HID_PAD, mmdt)
    b_eff_p = padb(b_eff, HID_PAD)
    w2c_p = pad2(params["fc_cnn_w2"].T, HID_PAD, HID_PAD, mmdt)
    b2c_p = padb(params["fc_cnn_b2"], HID_PAD)
    w1b_p = pad2(params["fc_cls_w1"].T, BOX_PAD, HID_PAD, mmdt)
    b1b_p = padb(params["fc_cls_b1"], HID_PAD)
    w2b_p = pad2(params["fc_cls_w2"].T, HID_PAD, HID_PAD, mmdt)
    b2b_p = padb(params["fc_cls_b2"], HID_PAD)

    # Block-diagonal final layer: column 0 = fc_cnn head, column 1 = fc_cls head.
    w3 = jnp.zeros((2 * HID_PAD, 2), jnp.float32)
    w3 = w3.at[:HID, 0].set(params["fc_cnn_w3"][0])
    w3 = w3.at[HID_PAD:HID_PAD + HID, 1].set(params["fc_cls_w3"][0])
    w3_p = w3.astype(mmdt)
    b3_p = jnp.stack([params["fc_cnn_b3"][0], params["fc_cls_b3"][0]])[None, :]

    # ---- batch padding / tiling (amortize per-call overhead, fill MXU rows) ----
    B_tile = min(128, _round_up(B, 8))
    B_pad = _round_up(B, B_tile)

    def pad_batch(x, dtype=jnp.float32):
        return jnp.pad(x, ((0, B_pad - B), (0, 0))).astype(dtype)

    cnn_flat = pad_batch(cnn_fs_nchw.reshape(B, Din), mmdt)     # NCHW flatten
    box_p = pad_batch(jnp.pad(box_fs, ((0, 0), (0, BOX_PAD - box_fs.shape[1]))),
                      mmdt)
    cnnp = pad_batch(cnn_pred[:, None])
    basp = pad_batch(basic_pred[:, None])

    batch_map = lambda i: (i, 0)
    const_map = lambda i: (0, 0)
    resident = lambda a: pl.BlockSpec(a.shape, const_map)       # weights stay put

    args = (cnn_flat, w_eff_p, b_eff_p, w2c_p, b2c_p,
            box_p, w1b_p, b1b_p, w2b_p, b2b_p,
            w3_p, b3_p, cnnp, basp)
    in_specs = [
        pl.BlockSpec((B_tile, Din), batch_map),
        resident(w_eff_p), resident(b_eff_p), resident(w2c_p), resident(b2c_p),
        pl.BlockSpec((B_tile, BOX_PAD), batch_map),
        resident(w1b_p), resident(b1b_p), resident(w2b_p), resident(b2b_p),
        resident(w3_p), resident(b3_p),
        pl.BlockSpec((B_tile, 1), batch_map),
        pl.BlockSpec((B_tile, 1), batch_map),
    ]

    out = pl.pallas_call(
        _wfc_kernel,
        out_shape=jax.ShapeDtypeStruct((B_pad, 1), jnp.float32),
        grid=(B_pad // B_tile,),
        in_specs=in_specs,
        out_specs=pl.BlockSpec((B_tile, 1), batch_map),
        compiler_params=pltpu.CompilerParams(
            dimension_semantics=("parallel",)),     # batch axis -> both TCs on v7x
    )(*args)
    return out[:B, 0]   # matches .squeeze() of the (B, 1) final prediction


def wfc_reference(params, cnn_fs_nchw, cnn_pred, box_fs, basic_pred):
    """PyTorch-style pure-JAX reference (NCHW conv + NCHW flatten), all f32."""
    y = lax.conv_general_dilated(
        cnn_fs_nchw, params["conv_w"], window_strides=(1, 1),
        padding=((1, 1), (1, 1)),
        dimension_numbers=("NCHW", "OIHW", "NCHW"))
    y = y + params["conv_b"][None, :, None, None]
    flat = y.reshape(y.shape[0], -1)

    def mlp(z, w1, b1, w2, b2, w3, b3):
        h = jax.nn.relu(z @ w1.T + b1)
        h = jax.nn.relu(h @ w2.T + b2)
        return h @ w3.T + b3

    wc = mlp(flat, params["fc_cnn_w1"], params["fc_cnn_b1"],
             params["fc_cnn_w2"], params["fc_cnn_b2"],
             params["fc_cnn_w3"], params["fc_cnn_b3"])[:, 0]
    wb = mlp(box_fs, params["fc_cls_w1"], params["fc_cls_b1"],
             params["fc_cls_w2"], params["fc_cls_b2"],
             params["fc_cls_w3"], params["fc_cls_b3"])[:, 0]
    return wc * cnn_pred + wb * basic_pred


def init_params(key, cin, cout, h, w, box_fs_size, hid=100):
    first_fc = cout * h * w
    ks = jax.random.split(key, 16)
    n = lambda k, shape, s=0.1: (s * jax.random.normal(k, shape)).astype(jnp.float32)
    return {
        "conv_w": n(ks[0], (cout, cin, 3, 3)),        # OIHW (PyTorch layout)
        "conv_b": n(ks[1], (cout,), 0.01),
        "fc_cnn_w1": n(ks[2], (hid, first_fc)),       # (out, in) PyTorch layout
        "fc_cnn_b1": n(ks[3], (hid,), 0.01),
        "fc_cnn_w2": n(ks[4], (hid, hid)),
        "fc_cnn_b2": n(ks[5], (hid,), 0.01),
        "fc_cnn_w3": n(ks[6], (1, hid)),
        "fc_cnn_b3": n(ks[7], (1,), 0.01),
        "fc_cls_w1": n(ks[8], (hid, box_fs_size)),
        "fc_cls_b1": n(ks[9], (hid,), 0.01),
        "fc_cls_w2": n(ks[10], (hid, hid)),
        "fc_cls_b2": n(ks[11], (hid,), 0.01),
        "fc_cls_w3": n(ks[12], (1, hid)),
        "fc_cls_b3": n(ks[13], (1,), 0.01),
    }


if __name__ == "__main__":
    # Shapes consistent with the module: cnn_model with in_shape=16 and
    # 2 downsampling blocks -> 4x4 feature map with last_conv_size=4 channels;
    # out_channel=8 -> first_fc_size = 4*4*8 = 128; box_featurespace_size=600.
    B, CIN, H, W = 2, 4, 4, 4
    COUT = 8
    BOX_FS = 600

    key = jax.random.PRNGKey(0)
    kp, k1, k2, k3, k4 = jax.random.split(key, 5)
    params = init_params(kp, CIN, COUT, H, W, BOX_FS)

    # Detached sub-model outputs (kernel inputs).
    cnn_fs = jax.random.normal(k1, (B, CIN, H, W), dtype=jnp.float32)   # NCHW
    cnn_pred = jax.random.normal(k2, (B,), dtype=jnp.float32)           # squeezed
    box_fs = jax.random.normal(k3, (B, BOX_FS), dtype=jnp.float32)      # flattened
    basic_pred = jax.random.normal(k4, (B,), dtype=jnp.float32)         # squeezed

    ref = jax.block_until_ready(
        wfc_reference(params, cnn_fs, cnn_pred, box_fs, basic_pred))

    # Exact-math path (f32 matmul operands): validates the conv/fc1 fold,
    # the lane padding and the block-diagonal head.
    out_f32 = jax.block_until_ready(
        wfc_forward(params, cnn_fs, cnn_pred, box_fs, basic_pred,
                    use_bf16_matmul=False))
    assert out_f32.shape == (B,)
    assert jnp.allclose(out_f32, ref, rtol=1e-3, atol=1e-3), (out_f32, ref)

    # Performance path (bf16 MXU operands, f32 accumulation / elementwise).
    out_bf16 = jax.block_until_ready(
        wfc_forward(params, cnn_fs, cnn_pred, box_fs, basic_pred,
                    use_bf16_matmul=True))
    assert out_bf16.shape == (B,)
    assert jnp.allclose(out_bf16, ref, rtol=5e-2, atol=5e-2), (out_bf16, ref)

    print("KERNEL_OK")
</pallas_src>

<mosaic_0001>
module attributes {stable_mosaic.version = 11 : i64} {
  func.func @_wfc_kernel(%arg0: i32, %arg1: memref<8x64xf32, #tpu.memory_space<vmem>>, %arg2: memref<64x128xf32, #tpu.memory_space<vmem>>, %arg3: memref<1x128xf32, #tpu.memory_space<vmem>>, %arg4: memref<128x128xf32, #tpu.memory_space<vmem>>, %arg5: memref<1x128xf32, #tpu.memory_space<vmem>>, %arg6: memref<8x640xf32, #tpu.memory_space<vmem>>, %arg7: memref<640x128xf32, #tpu.memory_space<vmem>>, %arg8: memref<1x128xf32, #tpu.memory_space<vmem>>, %arg9: memref<128x128xf32, #tpu.memory_space<vmem>>, %arg10: memref<1x128xf32, #tpu.memory_space<vmem>>, %arg11: memref<256x2xf32, #tpu.memory_space<vmem>>, %arg12: memref<1x2xf32, #tpu.memory_space<vmem>>, %arg13: memref<8x1xf32, #tpu.memory_space<vmem>>, %arg14: memref<8x1xf32, #tpu.memory_space<vmem>>, %arg15: memref<8x1xf32, #tpu.memory_space<vmem>>) attributes {dimension_semantics = [#tpu.dimension_semantics<parallel>], iteration_bounds = array<i64: 1>, scalar_prefetch = 0 : i64, scratch_operands = 0 : i64, tpu.core_type = #tpu.core_type<tc>, window_params = [{transform_indices = @transform_0, window_bounds = array<i64: 8, 64>}, {pipeline_mode = #tpu.pipeline_mode<synchronous>, transform_indices = @transform_1, window_bounds = array<i64: 64, 128>}, {pipeline_mode = #tpu.pipeline_mode<synchronous>, transform_indices = @transform_2, window_bounds = array<i64: 1, 128>}, {pipeline_mode = #tpu.pipeline_mode<synchronous>, transform_indices = @transform_3, window_bounds = array<i64: 128, 128>}, {pipeline_mode = #tpu.pipeline_mode<synchronous>, transform_indices = @transform_4, window_bounds = array<i64: 1, 128>}, {transform_indices = @transform_5, window_bounds = array<i64: 8, 640>}, {pipeline_mode = #tpu.pipeline_mode<synchronous>, transform_indices = @transform_6, window_bounds = array<i64: 640, 128>}, {pipeline_mode = #tpu.pipeline_mode<synchronous>, transform_indices = @transform_7, window_bounds = array<i64: 1, 128>}, {pipeline_mode = #tpu.pipeline_mode<synchronous>, transform_indices = @transform_8, window_bounds = array<i64: 128, 128>}, {pipeline_mode = #tpu.pipeline_mode<synchronous>, transform_indices = @transform_9, window_bounds = array<i64: 1, 128>}, {pipeline_mode = #tpu.pipeline_mode<synchronous>, transform_indices = @transform_10, window_bounds = array<i64: 256, 2>}, {pipeline_mode = #tpu.pipeline_mode<synchronous>, transform_indices = @transform_11, window_bounds = array<i64: 1, 2>}, {transform_indices = @transform_12, window_bounds = array<i64: 8, 1>}, {transform_indices = @transform_13, window_bounds = array<i64: 8, 1>}, {transform_indices = @transform_14, window_bounds = array<i64: 8, 1>}]} {
    %c0 = arith.constant 0 : index
    %c0_0 = arith.constant 0 : index
    %0 = vector.load %arg1[%c0, %c0_0] : memref<8x64xf32, #tpu.memory_space<vmem>>, vector<8x64xf32>
    %c0_1 = arith.constant 0 : index
    %c0_2 = arith.constant 0 : index
    %1 = vector.load %arg2[%c0_1, %c0_2] : memref<64x128xf32, #tpu.memory_space<vmem>>, vector<64x128xf32>
    %cst = arith.constant dense<0.000000e+00> : vector<8x128xf32>
    %2 = tpu.matmul %0, %1, %cst {dimension_numbers = #tpu.dot_dimension_numbers<[1], [0], [0], [1], [0, 0, 1, 1], [], []>} : vector<8x64xf32>, vector<64x128xf32>, vector<8x128xf32> -> vector<8x128xf32>
    %c0_3 = arith.constant 0 : index
    %c0_4 = arith.constant 0 : index
    %3 = vector.load %arg3[%c0_3, %c0_4] : memref<1x128xf32, #tpu.memory_space<vmem>>, vector<1x128xf32>
    %4 = vector.broadcast %3 : vector<1x128xf32> to vector<8x128xf32>
    %5 = arith.addf %2, %4 : vector<8x128xf32>
    %cst_5 = arith.constant 0.000000e+00 : f32
    %6 = vector.broadcast %cst_5 : f32 to vector<8x128xf32>
    %7 = arith.maximumf %5, %6 : vector<8x128xf32>
    %c0_6 = arith.constant 0 : index
    %c0_7 = arith.constant 0 : index
    %8 = vector.load %arg4[%c0_6, %c0_7] : memref<128x128xf32, #tpu.memory_space<vmem>>, vector<128x128xf32>
    %cst_8 = arith.constant dense<0.000000e+00> : vector<8x128xf32>
    %9 = tpu.matmul %7, %8, %cst_8 {dimension_numbers = #tpu.dot_dimension_numbers<[1], [0], [0], [1], [0, 0, 1, 1], [], []>} : vector<8x128xf32>, vector<128x128xf32>, vector<8x128xf32> -> vector<8x128xf32>
    %c0_9 = arith.constant 0 : index
    %c0_10 = arith.constant 0 : index
    %10 = vector.load %arg5[%c0_9, %c0_10] : memref<1x128xf32, #tpu.memory_space<vmem>>, vector<1x128xf32>
    %11 = vector.broadcast %10 : vector<1x128xf32> to vector<8x128xf32>
    %12 = arith.addf %9, %11 : vector<8x128xf32>
    %cst_11 = arith.constant 0.000000e+00 : f32
    %13 = vector.broadcast %cst_11 : f32 to vector<8x128xf32>
    %14 = arith.maximumf %12, %13 : vector<8x128xf32>
    %c0_12 = arith.constant 0 : index
    %c0_13 = arith.constant 0 : index
    %15 = vector.load %arg6[%c0_12, %c0_13] : memref<8x640xf32, #tpu.memory_space<vmem>>, vector<8x640xf32>
    %c0_14 = arith.constant 0 : index
    %c0_15 = arith.constant 0 : index
    %16 = vector.load %arg7[%c0_14, %c0_15] : memref<640x128xf32, #tpu.memory_space<vmem>>, vector<640x128xf32>
    %cst_16 = arith.constant dense<0.000000e+00> : vector<8x128xf32>
    %17 = tpu.matmul %15, %16, %cst_16 {dimension_numbers = #tpu.dot_dimension_numbers<[1], [0], [0], [1], [0, 0, 1, 1], [], []>} : vector<8x640xf32>, vector<640x128xf32>, vector<8x128xf32> -> vector<8x128xf32>
    %c0_17 = arith.constant 0 : index
    %c0_18 = arith.constant 0 : index
    %18 = vector.load %arg8[%c0_17, %c0_18] : memref<1x128xf32, #tpu.memory_space<vmem>>, vector<1x128xf32>
    %19 = vector.broadcast %18 : vector<1x128xf32> to vector<8x128xf32>
    %20 = arith.addf %17, %19 : vector<8x128xf32>
    %cst_19 = arith.constant 0.000000e+00 : f32
    %21 = vector.broadcast %cst_19 : f32 to vector<8x128xf32>
    %22 = arith.maximumf %20, %21 : vector<8x128xf32>
    %c0_20 = arith.constant 0 : index
    %c0_21 = arith.constant 0 : index
    %23 = vector.load %arg9[%c0_20, %c0_21] : memref<128x128xf32, #tpu.memory_space<vmem>>, vector<128x128xf32>
    %cst_22 = arith.constant dense<0.000000e+00> : vector<8x128xf32>
    %24 = tpu.matmul %22, %23, %cst_22 {dimension_numbers = #tpu.dot_dimension_numbers<[1], [0], [0], [1], [0, 0, 1, 1], [], []>} : vector<8x128xf32>, vector<128x128xf32>, vector<8x128xf32> -> vector<8x128xf32>
    %c0_23 = arith.constant 0 : index
    %c0_24 = arith.constant 0 : index
    %25 = vector.load %arg10[%c0_23, %c0_24] : memref<1x128xf32, #tpu.memory_space<vmem>>, vector<1x128xf32>
    %26 = vector.broadcast %25 : vector<1x128xf32> to vector<8x128xf32>
    %27 = arith.addf %24, %26 : vector<8x128xf32>
    %cst_25 = arith.constant 0.000000e+00 : f32
    %28 = vector.broadcast %cst_25 : f32 to vector<8x128xf32>
    %29 = arith.maximumf %27, %28 : vector<8x128xf32>
    %30 = tpu.concatenate %14, %29 in 1 : vector<8x128xf32>, vector<8x128xf32> -> vector<8x256xf32>
    %c0_26 = arith.constant 0 : index
    %c0_27 = arith.constant 0 : index
    %31 = vector.load %arg11[%c0_26, %c0_27] : memref<256x2xf32, #tpu.memory_space<vmem>>, vector<256x2xf32>
    %cst_28 = arith.constant dense<0.000000e+00> : vector<8x2xf32>
    %32 = tpu.matmul %30, %31, %cst_28 {dimension_numbers = #tpu.dot_dimension_numbers<[1], [0], [0], [1], [0, 0, 1, 1], [], []>} : vector<8x256xf32>, vector<256x2xf32>, vector<8x2xf32> -> vector<8x2xf32>
    %c0_29 = arith.constant 0 : index
    %c0_30 = arith.constant 0 : index
    %33 = vector.load %arg12[%c0_29, %c0_30] : memref<1x2xf32, #tpu.memory_space<vmem>>, vector<1x2xf32>
    %34 = vector.broadcast %33 : vector<1x2xf32> to vector<8x2xf32>
    %35 = arith.addf %32, %34 : vector<8x2xf32>
    %36 = vector.extract_strided_slice %35 {offsets = [0, 0], sizes = [8, 1], strides = [1, 1]} : vector<8x2xf32> to vector<8x1xf32>
    %c0_31 = arith.constant 0 : index
    %c0_32 = arith.constant 0 : index
    %37 = vector.load %arg13[%c0_31, %c0_32] : memref<8x1xf32, #tpu.memory_space<vmem>>, vector<8x1xf32>
    %38 = arith.mulf %36, %37 : vector<8x1xf32>
    %39 = vector.extract_strided_slice %35 {offsets = [0, 1], sizes = [8, 1], strides = [1, 1]} : vector<8x2xf32> to vector<8x1xf32>
    %c0_33 = arith.constant 0 : index
    %c0_34 = arith.constant 0 : index
    %40 = vector.load %arg14[%c0_33, %c0_34] : memref<8x1xf32, #tpu.memory_space<vmem>>, vector<8x1xf32>
    %41 = arith.mulf %39, %40 : vector<8x1xf32>
    %42 = arith.addf %38, %41 : vector<8x1xf32>
    %c0_35 = arith.constant 0 : index
    %c0_36 = arith.constant 0 : index
    %43 = vector.load %arg15[%c0_35, %c0_36] : memref<8x1xf32, #tpu.memory_space<vmem>>, vector<8x1xf32>
    tpu.vector_store %arg15[%c0_35, %c0_36], %42 {strides = array<i32>} : memref<8x1xf32, #tpu.memory_space<vmem>>, vector<8x1xf32>,
    return
  }
  func.func @transform_0(%arg0: i32) -> (i32, i32) {
    %c0_i32 = arith.constant 0 : i32
    %c0_i32_0 = arith.constant 0 : i32
    return %arg0, %c0_i32 : i32, i32
  }
  func.func @transform_1(%arg0: i32) -> (i32, i32) {
    %c0_i32 = arith.constant 0 : i32
    %c0_i32_0 = arith.constant 0 : i32
    %c0_i32_1 = arith.constant 0 : i32
    return %c0_i32, %c0_i32_0 : i32, i32
  }
  func.func @transform_2(%arg0: i32) -> (i32, i32) {
    %c0_i32 = arith.constant 0 : i32
    %c0_i32_0 = arith.constant 0 : i32
    %c0_i32_1 = arith.constant 0 : i32
    return %c0_i32, %c0_i32_0 : i32, i32
  }
  func.func @transform_3(%arg0: i32) -> (i32, i32) {
    %c0_i32 = arith.constant 0 : i32
    %c0_i32_0 = arith.constant 0 : i32
    %c0_i32_1 = arith.constant 0 : i32
    return %c0_i32, %c0_i32_0 : i32, i32
  }
  func.func @transform_4(%arg0: i32) -> (i32, i32) {
    %c0_i32 = arith.constant 0 : i32
    %c0_i32_0 = arith.constant 0 : i32
    %c0_i32_1 = arith.constant 0 : i32
    return %c0_i32, %c0_i32_0 : i32, i32
  }
  func.func @transform_5(%arg0: i32) -> (i32, i32) {
    %c0_i32 = arith.constant 0 : i32
    %c0_i32_0 = arith.constant 0 : i32
    return %arg0, %c0_i32 : i32, i32
  }
  func.func @transform_6(%arg0: i32) -> (i32, i32) {
    %c0_i32 = arith.constant 0 : i32
    %c0_i32_0 = arith.constant 0 : i32
    %c0_i32_1 = arith.constant 0 : i32
    return %c0_i32, %c0_i32_0 : i32, i32
  }
  func.func @transform_7(%arg0: i32) -> (i32, i32) {
    %c0_i32 = arith.constant 0 : i32
    %c0_i32_0 = arith.constant 0 : i32
    %c0_i32_1 = arith.constant 0 : i32
    return %c0_i32, %c0_i32_0 : i32, i32
  }
  func.func @transform_8(%arg0: i32) -> (i32, i32) {
    %c0_i32 = arith.constant 0 : i32
    %c0_i32_0 = arith.constant 0 : i32
    %c0_i32_1 = arith.constant 0 : i32
    return %c0_i32, %c0_i32_0 : i32, i32
  }
  func.func @transform_9(%arg0: i32) -> (i32, i32) {
    %c0_i32 = arith.constant 0 : i32
    %c0_i32_0 = arith.constant 0 : i32
    %c0_i32_1 = arith.constant 0 : i32
    return %c0_i32, %c0_i32_0 : i32, i32
  }
  func.func @transform_10(%arg0: i32) -> (i32, i32) {
    %c0_i32 = arith.constant 0 : i32
    %c0_i32_0 = arith.constant 0 : i32
    %c0_i32_1 = arith.constant 0 : i32
    return %c0_i32, %c0_i32_0 : i32, i32
  }
  func.func @transform_11(%arg0: i32) -> (i32, i32) {
    %c0_i32 = arith.constant 0 : i32
    %c0_i32_0 = arith.constant 0 : i32
    %c0_i32_1 = arith.constant 0 : i32
    return %c0_i32, %c0_i32_0 : i32, i32
  }
  func.func @transform_12(%arg0: i32) -> (i32, i32) {
    %c0_i32 = arith.constant 0 : i32
    %c0_i32_0 = arith.constant 0 : i32
    return %arg0, %c0_i32 : i32, i32
  }
  func.func @transform_13(%arg0: i32) -> (i32, i32) {
    %c0_i32 = arith.constant 0 : i32
    %c0_i32_0 = arith.constant 0 : i32
    return %arg0, %c0_i32 : i32, i32
  }
  func.func @transform_14(%arg0: i32) -> (i32, i32) {
    %c0_i32 = arith.constant 0 : i32
    %c0_i32_0 = arith.constant 0 : i32
    return %arg0, %c0_i32 : i32, i32
  }
}

</mosaic_0001>

<bundles_post_ra>
// kernel: tpu_custom_call.1
= control target key start
LH: loop header
LB: loop body
LE: loop exit
PB: predicated region body
PF: predicated region fallthrough
CT: control target
= control target key end

     0   :  { %19 = vsyncpa [#allocation3], 0  ;;  %s1845_s0 = inlined_call_operand.hbm [shape: f32[8,64], index: 0, kind: input, shape index: {}]   ;;  %s1846_s1 = inlined_call_operand.hbm [shape: f32[64,128], index: 1, kind: input, shape index: {}]   ;;  %s1847_s2 = inlined_call_operand.hbm [shape: f32[1,128], index: 2, kind: input, shape index: {}]   ;;  %s1848_s3 = inlined_call_operand.vmem [shape: f32[128,128], index: 3, kind: input, shape index: {}]   ;;  %s1849_s4 = inlined_call_operand.hbm [shape: f32[1,128], index: 4, kind: input, shape index: {}]   ;;  %s1850_s5 = inlined_call_operand.vmem [shape: f32[8,640], index: 5, kind: input, shape index: {}]   ;;  %s1851_s6 = inlined_call_operand.hbm [shape: f32[640,128], index: 6, kind: input, shape index: {}]   ;;  %s1852_s7 = inlined_call_operand.vmem [shape: f32[1,128], index: 7, kind: input, shape index: {}]   ;;  %s1853_s8 = inlined_call_operand.vmem [shape: f32[128,128], index: 8, kind: input, shape index: {}]   ;;  %s1854_s9 = inlined_call_operand.vmem [shape: f32[1,128], index: 9, kind: input, shape index: {}]   ;;  %s1855_s10 = inlined_call_operand.vmem [shape: f32[256,2], index: 10, kind: input, shape index: {}]   ;;  %s1856_s11 = inlined_call_operand.vmem [shape: f32[1,2], index: 11, kind: input, shape index: {}]   ;;  %s1857_s12 = inlined_call_operand.vmem [shape: f32[8,1], index: 12, kind: input, shape index: {}]   ;;  %s1858_s13 = inlined_call_operand.vmem [shape: f32[8,1], index: 13, kind: input, shape index: {}]   ;;  %s1859_s14 = inlined_call_operand.vmem [shape: f32[8,1], index: 14, kind: output, shape index: {}]  }
   0x1   :  { %20 = vsyncpa [#allocation5], 0 }
   0x2   :  { %21 = vsyncpa [#allocation8], 0  ;;  %s1425_s29 = smov [#allocation4]   ;;  %s1309_s17 = scalar_lea.hbm %s1846_s1, 1024 }
   0x3   :  { %s37_s30 = sshll.u32 %s1425_s29, 4  ;;  %p1310_p0 = scmp.ne.s32.totalorder %s1846_s1, %s1309_s17  ;;  %s38_s30 = int_to_ptr.vmem [resolvable:$true] %s37_s30 }
   0x4   :  { %p1313_p1 = scmp.lt.u32.totalorder %s1309_s17, %s1846_s1 }
   0x6   :  { %p1315_p2 = pnand %p1313_p1, %p1310_p0 }
   0x8   :  { %1318 = shalt.err (!%p1315_p2)
}
   0x9   :  { %s1319_s22 = scalar_lea.vmem %s38_s30, 1024  ;;  %p1324_p4 = scmp.lt.s32.totalorder %s38_s30, %s38_s30 }
   0xa   :  { %p1320_p3 = scmp.ne.s32.totalorder %s38_s30, %s1319_s22  ;;  %p1325_p5 = scmp.lt.s32.totalorder %s1319_s22, %s1319_s22 }
   0xc   :  { %p1326_p6 = por %p1325_p5, %p1324_p4 }
   0xe   :  { %p1327_p7 = pnand %p1326_p6, %p1320_p3 }
  0x10   :  { %1330 = shalt.err (!%p1327_p7)
}
  0x11   :  { %s1426_s23 = smov 128   ;;  %s1427_s24 = smov 8  }
  0x12   :  { %43 = dma.hbm_to_vmem [thread:$0]  %s1846_s1, 1024, %s38_s30, [#allocation5], %s1426_s23, %s1426_s23, %s1427_s24  }
  0x13   :  { %s1428_s27 = smov [#allocation7]   ;;  %s1429_s29 = smov [#allocation2]  }
  0x14   :  { %s62_s28 = sshll.u32 %s1428_s27, 4  ;;  %s28_s15 = sshll.u32 %s1429_s29, 4  ;;  %s63_s28 = int_to_ptr.vmem [resolvable:$true] %s62_s28  ;;  %s29_s15 = int_to_ptr.vmem [resolvable:$true] %s28_s15 }
  0x15   :  { %s1331_s18 = scalar_lea.hbm %s1849_s4, 16 }
  0x16   :  { %p1332_p8 = scmp.ne.s32.totalorder %s1849_s4, %s1331_s18  ;;  %p1335_p9 = scmp.lt.u32.totalorder %s1331_s18, %s1849_s4 }
  0x18   :  { %p1337_p10 = pnand %p1335_p9, %p1332_p8 }
  0x1a   :  { %1340 = shalt.err (!%p1337_p10)
}
  0x1b   :  { %s1341_s1 = scalar_lea.vmem %s63_s28, 16  ;;  %s1345_s30 = scalar_lea.vmem %s63_s28, 32 }
  0x1c   :  { %p1342_p11 = scmp.ne.s32.totalorder %s63_s28, %s1341_s1  ;;  %p1346_p12 = scmp.lt.s32.totalorder %s63_s28, %s63_s28 }
  0x1d   :  { %p1347_p13 = scmp.lt.s32.totalorder %s1345_s30, %s1341_s1 }
  0x1f   :  { %p1348_p0 = por %p1347_p13, %p1346_p12 }
  0x21   :  { %p1349_p1 = pnand %p1348_p0, %p1342_p11 }
  0x23   :  { %1352 = shalt.err (!%p1349_p1)
}
  0x24   :  { %65 = dma.hbm_to_vmem [thread:$0]  %s1849_s4, 16, %s63_s28, [#allocation8]  }
  0x25   :  { %s1353_s16 = scalar_lea.hbm %s1845_s0, 128 }
  0x26   :  { %p1354_p2 = scmp.ne.s32.totalorder %s1845_s0, %s1353_s16  ;;  %p1357_p3 = scmp.lt.u32.totalorder %s1353_s16, %s1845_s0 }
  0x28   :  { %p1359_p4 = pnand %p1357_p3, %p1354_p2 }
  0x2a   :  { %1362 = shalt.err (!%p1359_p4)
}
  0x2b   :  { %s1363_s21 = scalar_lea.vmem %s29_s15, 128  ;;  %p1368_p6 = scmp.lt.s32.totalorder %s29_s15, %s29_s15 }
  0x2c   :  { %p1364_p5 = scmp.ne.s32.totalorder %s29_s15, %s1363_s21  ;;  %p1369_p7 = scmp.lt.s32.totalorder %s1363_s21, %s1363_s21 }
  0x2e   :  { %p1370_p8 = por %p1369_p7, %p1368_p6 }
  0x30   :  { %p1371_p9 = pnand %p1370_p8, %p1364_p5 }
  0x32   :  { %1374 = shalt.err (!%p1371_p9)
}
  0x33   :  { %31 = dma.hbm_to_vmem [thread:$0]  %s1845_s0, 128, %s29_s15, [#allocation3]  }
  0x34   :  { %s1430_s22 = smov [#allocation6]   ;;  %s1431_s30 = smov [#allocation9]  }
  0x35   :  { %s50_s1 = sshll.u32 %s1430_s22, 4  ;;  %s73_s25 = sshll.u32 %s1431_s30, 4  ;;  %s51_s1 = int_to_ptr.vmem [resolvable:$true] %s50_s1  ;;  %s74_s25 = int_to_ptr.vmem [resolvable:$true] %s73_s25 }
  0x36   :  { %s1375_s29 = scalar_lea.hbm %s1847_s2, 16 }
  0x37   :  { %p1376_p10 = scmp.ne.s32.totalorder %s1847_s2, %s1375_s29  ;;  %p1379_p11 = scmp.lt.u32.totalorder %s1375_s29, %s1847_s2 }
  0x39   :  { %p1381_p12 = pnand %p1379_p11, %p1376_p10 }
  0x3b   :  { %1384 = shalt.err (!%p1381_p12)
}
  0x3c   :  { %s1385_s0 = scalar_lea.vmem %s51_s1, 16  ;;  %s1389_s15 = scalar_lea.vmem %s51_s1, 32 }
  0x3d   :  { %p1386_p13 = scmp.ne.s32.totalorder %s51_s1, %s1385_s0  ;;  %p1390_p0 = scmp.lt.s32.totalorder %s51_s1, %s51_s1 }
  0x3e   :  { %p1391_p1 = scmp.lt.s32.totalorder %s1389_s15, %s1385_s0 }
  0x40   :  { %p1392_p2 = por %p1391_p1, %p1390_p0 }
  0x42   :  { %p1393_p3 = pnand %p1392_p2, %p1386_p13 }
  0x44   :  { %1396 = shalt.err (!%p1393_p3)
}
  0x45   :  { %53 = dma.hbm_to_vmem [thread:$0]  %s1847_s2, 16, %s51_s1, [#allocation5]  }
  0x46   :  { %s1397_s22 = scalar_lea.hbm %s1851_s6, 10240 }
  0x47   :  { %p1398_p4 = scmp.ne.s32.totalorder %s1851_s6, %s1397_s22  ;;  %p1401_p5 = scmp.lt.u32.totalorder %s1397_s22, %s1851_s6 }
  0x49   :  { %p1403_p6 = pnand %p1401_p5, %p1398_p4 }
  0x4b   :  { %1406 = shalt.err (!%p1403_p6)
}
  0x4c   :  { %s1407_s16 = scalar_lea.vmem %s74_s25, 10240  ;;  %p1412_p8 = scmp.lt.s32.totalorder %s74_s25, %s74_s25 }
  0x4d   :  { %p1408_p7 = scmp.ne.s32.totalorder %s74_s25, %s1407_s16  ;;  %p1413_p9 = scmp.lt.s32.totalorder %s1407_s16, %s1407_s16 }
  0x4f   :  { %p1414_p10 = por %p1413_p9, %p1412_p8 }
  0x51   :  { %p1415_p11 = pnand %p1414_p10, %p1408_p7 }
  0x53   :  { %1418 = shalt.err (!%p1415_p11)
}
  0x54   :  { %79 = dma.hbm_to_vmem [thread:$0]  %s1851_s6, 10240, %s74_s25, [#allocation8], %s1426_s23, %s1426_s23, %s1427_s24  }
  0x55   :  { %1419 = dma.done.wait [#allocation3], 128  }
  0x56   :  { %1420 = vsyncadd [#allocation3], 4294967168 }
  0x57   :  { %1421 = dma.done.wait [#allocation5], 1040  }
  0x58   :  { %1422 = vsyncadd [#allocation5], 4294966256 }
  0x59   :  { %1423 = dma.done.wait [#allocation8], 10256  }
  0x5a   :  { %1424 = vsyncadd [#allocation8], 4294957040  ;;  %v1432_v0 = vmov 0.0|0.0   ;;  %vm1433_vm0 = vmmov 0   ;;  %v1434_v1 = vmov 0.0   ;;  %v110_v2 = vld [vmem:[#allocation4] sm:$0xff] }
  0x5b   :  { %1117 = vmatprep.subr.bf16.mxu0 %v1432_v0  ;;  %1009 = vmatprep.mubr.msk.f32.mxu0 %vm1433_vm0, %v1434_v1  ;;  %v111_v3 = vld [vmem:[#allocation4 + $0x8] sm:$0xff]  ;;  %v112_v4 = vld [vmem:[#allocation4 + $0x10] sm:$0xff]  ;;  %v113_v6 = vld [vmem:[#allocation4 + $0x18] sm:$0xff]  ;;  %vm125_vm1 = vcmask 523264   ;;  %s1435_s25 = smov 1   ;;  %vm813_vm2 = vcmask 7168  }
  0x5c   :  { %1129 = vmatprep.subr.bf16.mxu1 %v1432_v0  ;;  %1044 = vmatprep.mubr.msk.f32.mxu1 %vm1433_vm0, %v1434_v1  ;;  %v1118_v5 = vpack.c.bf16 %v111_v3, %v110_v2  ;;  %v1121_v7 = vpack.c.bf16 %v113_v6, %v112_v4  ;;  %v114_v8 = vld [vmem:[#allocation4 + $0x20] sm:$0xff]  ;;  %v200_v9 = vld [vmem:[%s1848_s3] sm:$0xff]  ;;  %v115_v11 = vld [vmem:[#allocation4 + $0x28] sm:$0xff] }
  0x5d   :  { %v201_v10 = vld [vmem:[%s1848_s3 + $0x8] sm:$0xff]  ;;  %v202_v13 = vld [vmem:[%s1848_s3 + $0x10] sm:$0xff]  ;;  %v203_v14 = vld [vmem:[%s1848_s3 + $0x18] sm:$0xff]  ;;  %v1124_v16 = vpack.c.bf16 %v115_v11, %v114_v8 }
  0x5e   :  { %1119 = vmatpush3.bf16.msra.mxu0 %v1118_v5  ;;  %v1130_v12 = vpack.c.bf16 %v201_v10, %v200_v9  ;;  %v1133_v15 = vpack.c.bf16 %v203_v14, %v202_v13  ;;  %v204_v17 = vld [vmem:[%s1848_s3 + $0x20] sm:$0xff]  ;;  %v205_v18 = vld [vmem:[%s1848_s3 + $0x28] sm:$0xff]  ;;  %v116_v19 = vld [vmem:[#allocation4 + $0x30] sm:$0xff] }
  0x5f   :  { %1120 = vmatprep.subr.bf16.mxu0 %v1432_v0  ;;  %v117_v20 = vld [vmem:[#allocation4 + $0x38] sm:$0xff]  ;;  %v315_v21 = vld [vmem:[#allocation9 + $0x80] sm:$0xff]  ;;  %v316_v22 = vld [vmem:[#allocation9 + $0x88] sm:$0xff]  ;;  %v1136_v23 = vpack.c.bf16 %v205_v18, %v204_v17 }
  0x60   :  { %1131 = vmatpush3.bf16.msra.mxu1 %v1130_v12  ;;  %v1127_v24 = vpack.c.bf16 %v117_v20, %v116_v19  ;;  %v206_v25 = vld [vmem:[%s1848_s3 + $0x30] sm:$0xff]  ;;  %v207_v26 = vld [vmem:[%s1848_s3 + $0x38] sm:$0xff]  ;;  %v1153_v27 = vpack.c.bf16 %v316_v22, %v315_v21  ;;  %v318_v31 = vld [vmem:[#allocation9 + $0x98] sm:$0xff] }
  0x61   :  { %1132 = vmatprep.subr.bf16.mxu1 %v1432_v0  ;;  %v299_v28 = vld [vmem:[#allocation9] sm:$0xff]  ;;  %v300_v29 = vld [vmem:[#allocation9 + $0x8] sm:$0xff]  ;;  %v317_v30 = vld [vmem:[#allocation9 + $0x90] sm:$0xff]  ;;  %v1139_v32 = vpack.c.bf16 %v207_v26, %v206_v25 }
  0x62   :  { %1122 = vmatpush3.bf16.msra.mxu0 %v1121_v7  ;;  %v109_v33 = vld [vmem:[#allocation2] sm:$0xff]  ;;  %v1155_v34 = vpack.c.bf16 %v300_v29, %v299_v28  ;;  %v209_v36 = vld [vmem:[%s1848_s3 + $0x48] sm:$0xff]  ;;  %v1157_v37 = vpack.c.bf16 %v318_v31, %v317_v30  ;;  %v320_v41 = vld [vmem:[#allocation9 + $0xa8] sm:$0xff] }
  0x63   :  { %1123 = vmatprep.subr.bf16.mxu0 %v1432_v0  ;;  %v208_v35 = vld [vmem:[%s1848_s3 + $0x40] sm:$0xff]  ;;  %v319_v40 = vld [vmem:[#allocation9 + $0xa0] sm:$0xff]  ;;  %v211_v45 = vld [vmem:[%s1848_s3 + $0x58] sm:$0xff] }
  0x64   :  { %1134 = vmatpush3.bf16.msra.mxu1 %v1133_v15  ;;  %v301_v38 = vld [vmem:[#allocation9 + $0x10] sm:$0xff]  ;;  %v302_v39 = vld [vmem:[#allocation9 + $0x18] sm:$0xff]  ;;  %v1142_v42 = vpack.c.bf16 %v209_v36, %v208_v35  ;;  %v210_v44 = vld [vmem:[%s1848_s3 + $0x50] sm:$0xff]  ;;  %v1161_v46 = vpack.c.bf16 %v320_v41, %v319_v40 }
  0x65   :  { %1135 = vmatprep.subr.bf16.mxu1 %v1432_v0  ;;  %v1159_v43 = vpack.c.bf16 %v302_v39, %v301_v38  ;;  %v303_v47 = vld [vmem:[#allocation9 + $0x20] sm:$0xff]  ;;  %v304_v48 = vld [vmem:[#allocation9 + $0x28] sm:$0xff]  ;;  %v321_v49 = vld [vmem:[#allocation9 + $0xb0] sm:$0xff]  ;;  %v1145_v51 = vpack.c.bf16 %v211_v45, %v210_v44 }
  0x66   :  { %1125 = vmatpush3.bf16.msra.mxu0 %v1124_v16  ;;  %v322_v50 = vld [vmem:[#allocation9 + $0xb8] sm:$0xff]  ;;  %v1163_v52 = vpack.c.bf16 %v304_v48, %v303_v47  ;;  %v305_v56 = vld [vmem:[#allocation9 + $0x30] sm:$0xff]  ;;  %v323_v58 = vld [vmem:[#allocation9 + $0xc0] sm:$0xff] }
  0x67   :  { %1126 = vmatprep.subr.bf16.mxu0 %v1432_v0  ;;  %v212_v53 = vld [vmem:[%s1848_s3 + $0x60] sm:$0xff]  ;;  %v213_v54 = vld [vmem:[%s1848_s3 + $0x68] sm:$0xff]  ;;  %v1165_v55 = vpack.c.bf16 %v322_v50, %v321_v49  ;;  %v324_v59 = vld [vmem:[#allocation9 + $0xc8] sm:$0xff] }
  0x68   :  { %1137 = vmatpush3.bf16.msra.mxu1 %v1136_v23  ;;  %v306_v57 = vld [vmem:[#allocation9 + $0x38] sm:$0xff]  ;;  %v1148_v60 = vpack.c.bf16 %v213_v54, %v212_v53  ;;  %v1169_v62 = vpack.c.bf16 %v324_v59, %v323_v58  ;;  %v307_v63 = vld [vmem:[#allocation9 + $0x40] sm:$0xff]  ;;  %v308_v2 = vld [vmem:[#allocation9 + $0x48] sm:$0xff] }
  0x69   :  { %1138 = vmatprep.subr.bf16.mxu1 %v1432_v0  ;;  %v1167_v61 = vpack.c.bf16 %v306_v57, %v305_v56  ;;  %v325_v3 = vld [vmem:[#allocation9 + $0xd0] sm:$0xff]  ;;  %v326_v4 = vld [vmem:[#allocation9 + $0xd8] sm:$0xff]  ;;  %v1171_v5 = vpack.c.bf16 %v308_v2, %v307_v63  ;;  %v327_v10 = vld [vmem:[#allocation9 + $0xe0] sm:$0xff] }
  0x6a   :  { %1128 = vmatpush3.bf16.msra.mxu0 %v1127_v24  ;;  %v1173_v6 = vpack.c.bf16 %v326_v4, %v325_v3  ;;  %v309_v7 = vld [vmem:[#allocation9 + $0x50] sm:$0xff]  ;;  %v310_v8 = vld [vmem:[#allocation9 + $0x58] sm:$0xff]  ;;  %v328_v11 = vld [vmem:[#allocation9 + $0xe8] sm:$0xff] }
  0x6b   :  { %1154 = vmatprep.subr.bf16.mxu0 %v1153_v27  ;;  %v1175_v9 = vpack.c.bf16 %v310_v8, %v309_v7  ;;  %v1177_v12 = vpack.c.bf16 %v328_v11, %v327_v10  ;;  %v214_v13 = vld [vmem:[%s1848_s3 + $0x70] sm:$0xff]  ;;  %v215_v14 = vld [vmem:[%s1848_s3 + $0x78] sm:$0xff]  ;;  %v330_v20 = vld [vmem:[#allocation9 + $0xf8] sm:$0xff] }
  0x6c   :  { %1140 = vmatpush3.bf16.msra.mxu1 %v1139_v32  ;;  %v311_v15 = vld [vmem:[#allocation9 + $0x60] sm:$0xff]  ;;  %v1151_v16 = vpack.c.bf16 %v215_v14, %v214_v13  ;;  %v312_v17 = vld [vmem:[#allocation9 + $0x68] sm:$0xff]  ;;  %v329_v19 = vld [vmem:[#allocation9 + $0xf0] sm:$0xff] }
  0x6d   :  { %1010 = vmatmul.mubr.msk.f32.vlgmr.msra.gmra.mrb[0].mxu0 %vm125_vm1, %v109_v33  ;;  %1141 = vmatprep.subr.bf16.mxu1 %v1432_v0  ;;  %v1179_v18 = vpack.c.bf16 %v312_v17, %v311_v15  ;;  %v347_v21 = vld [vmem:[#allocation9 + $0x180] sm:$0xff]  ;;  %v1181_v22 = vpack.c.bf16 %v330_v20, %v329_v19  ;;  %v348_v23 = vld [vmem:[#allocation9 + $0x188] sm:$0xff]  ;;  %v313_v24 = vld [vmem:[#allocation9 + $0x70] sm:$0xff] }
  0x6e   :  { %1156 = vmatpush3.bf16.msra.mxu0 %v1155_v34  ;;  %v314_v25 = vld [vmem:[#allocation9 + $0x78] sm:$0xff]  ;;  %v1185_v26 = vpack.c.bf16 %v348_v23, %v347_v21  ;;  %v363_v30 = vld [vmem:[#allocation9 + $0x200] sm:$0xff]  ;;  %v364_v31 = vld [vmem:[#allocation9 + $0x208] sm:$0xff] }
  0x6f   :  { %1158 = vmatprep.subr.bf16.mxu0 %v1157_v37  ;;  %v1183_v27 = vpack.c.bf16 %v314_v25, %v313_v24  ;;  %v295_v28 = vld [vmem:[%s1850_s5 + $0x8] sm:$0xff]  ;;  %v294_v29 = vld [vmem:[%s1850_s5] sm:$0xff]  ;;  %v1218_v32 = vpack.c.bf16 %v364_v31, %v363_v30  ;;  %v368_v37 = vld [vmem:[#allocation9 + $0x228] sm:$0xff] }
  0x70   :  { %1143 = vmatpush3.bf16.msra.mxu1 %v1142_v42  ;;  %450 = vmatprep.mubr.f32.mxu0 %v295_v28  ;;  %v365_v33 = vld [vmem:[#allocation9 + $0x210] sm:$0xff]  ;;  %v366_v34 = vld [vmem:[#allocation9 + $0x218] sm:$0xff]  ;;  %v367_v36 = vld [vmem:[#allocation9 + $0x220] sm:$0xff] }
  0x71   :  { %1144 = vmatprep.subr.bf16.mxu1 %v1432_v0  ;;  %v1221_v35 = vpack.c.bf16 %v366_v34, %v365_v33  ;;  %v1224_v38 = vpack.c.bf16 %v368_v37, %v367_v36  ;;  %v369_v39 = vld [vmem:[#allocation9 + $0x230] sm:$0xff]  ;;  %v370_v40 = vld [vmem:[#allocation9 + $0x238] sm:$0xff]  ;;  %v371_v42 = vld [vmem:[#allocation9 + $0x240] sm:$0xff] }
  0x72   :  { %1160 = vmatpush3.bf16.msra.mxu0 %v1159_v43  ;;  %v1227_v41 = vpack.c.bf16 %v370_v40, %v369_v39  ;;  %v372_v43 = vld [vmem:[#allocation9 + $0x248] sm:$0xff]  ;;  %v373_v45 = vld [vmem:[#allocation9 + $0x250] sm:$0xff]  ;;  %v375_v48 = vld [vmem:[#allocation9 + $0x260] sm:$0xff] }
  0x73   :  { %1162 = vmatprep.subr.bf16.mxu0 %v1161_v46  ;;  %v1230_v44 = vpack.c.bf16 %v372_v43, %v371_v42  ;;  %v374_v46 = vld [vmem:[#allocation9 + $0x258] sm:$0xff]  ;;  %v376_v49 = vld [vmem:[#allocation9 + $0x268] sm:$0xff]  ;;  %v331_v56 = vld [vmem:[#allocation9 + $0x100] sm:$0xff] }
  0x74   :  { %1146 = vmatpush3.bf16.msra.mxu1 %v1145_v51  ;;  %v1233_v47 = vpack.c.bf16 %v374_v46, %v373_v45  ;;  %v1236_v50 = vpack.c.bf16 %v376_v49, %v375_v48  ;;  %v377_v51 = vld [vmem:[#allocation9 + $0x270] sm:$0xff]  ;;  %v332_v57 = vld [vmem:[#allocation9 + $0x108] sm:$0xff]  ;;  %v351_v7 = vld [vmem:[#allocation9 + $0x1a0] sm:$0xff] }
  0x75   :  { %1147 = vmatprep.subr.bf16.mxu1 %v1432_v0  ;;  %v298_v54 = vld [vmem:[%s1850_s5 + $0x20] sm:$0xff]  ;;  %v1187_v63 = vpack.c.bf16 %v332_v57, %v331_v56  ;;  %v352_v8 = vld [vmem:[#allocation9 + $0x1a8] sm:$0xff]  ;;  %v335_v11 = vld [vmem:[#allocation9 + $0x120] sm:$0xff] }
  0x76   :  { %1164 = vmatpush3.bf16.msra.mxu0 %v1163_v52  ;;  %v378_v52 = vld [vmem:[#allocation9 + $0x278] sm:$0xff]  ;;  %v349_v59 = vld [vmem:[#allocation9 + $0x190] sm:$0xff]  ;;  %v1193_v10 = vpack.c.bf16 %v352_v8, %v351_v7  ;;  %v355_v19 = vld [vmem:[#allocation9 + $0x1c0] sm:$0xff] }
  0x77   :  { %1166 = vmatprep.subr.bf16.mxu0 %v1165_v55  ;;  %v1239_v53 = vpack.c.bf16 %v378_v52, %v377_v51  ;;  %v822_v55 = vld [vmem:[#allocation6] ss:$0 sm:$0xff]  ;;  %v333_v4 = vld [vmem:[#allocation9 + $0x110] sm:$0xff]  ;;  %v356_v20 = vld [vmem:[#allocation9 + $0x1c8] sm:$0xff] }
  0x78   :  { %1149 = vmatpush3.bf16.msra.mxu1 %v1148_v60  ;;  %v350_v60 = vld [vmem:[#allocation9 + $0x198] sm:$0xff]  ;;  %v353_v13 = vld [vmem:[#allocation9 + $0x1b0] sm:$0xff]  ;;  %v339_v23 = vld [vmem:[#allocation9 + $0x140] sm:$0xff] }
  0x79   :  { %1150 = vmatprep.subr.bf16.mxu1 %v1432_v0  ;;  %v1189_v3 = vpack.c.bf16 %v350_v60, %v349_v59  ;;  %v354_v14 = vld [vmem:[#allocation9 + $0x1b8] sm:$0xff]  ;;  %v337_v17 = vld [vmem:[#allocation9 + $0x130] sm:$0xff]  ;;  %v340_v24 = vld [vmem:[#allocation9 + $0x148] sm:$0xff] }
  0x7a   :  { %1168 = vmatpush3.bf16.msra.mxu0 %v1167_v61  ;;  %v357_v25 = vld [vmem:[#allocation9 + $0x1d0] sm:$0xff]  ;;  %v342_v30 = vld [vmem:[#allocation9 + $0x158] sm:$0xff]  ;;  %v359_v31 = vld [vmem:[#allocation9 + $0x1e0] sm:$0xff] }
  0x7b   :  { %1170 = vmatprep.subr.bf16.mxu0 %v1169_v62  ;;  %v344_v36 = vld [vmem:[#allocation9 + $0x168] sm:$0xff]  ;;  %v361_v37 = vld [vmem:[#allocation9 + $0x1f0] sm:$0xff]  ;;  %v346_v42 = vld [vmem:[#allocation9 + $0x178] sm:$0xff] }
  0x7c   :  { %1152 = vmatpush3.bf16.msra.mxu1 %v1151_v16  ;;  %v1197_v16 = vpack.c.bf16 %v354_v14, %v353_v13  ;;  %v597_v45 = vld [vmem:[%s1853_s8] sm:$0xff]  ;;  %v598_v46 = vld [vmem:[%s1853_s8 + $0x8] sm:$0xff]  ;;  %v599_v49 = vld [vmem:[%s1853_s8 + $0x10] sm:$0xff] }
  0x7d   :  { %1186 = vmatprep.subr.bf16.mxu1 %v1185_v26  ;;  %v358_v26 = vld [vmem:[#allocation9 + $0x1d8] sm:$0xff]  ;;  %v1242_v48 = vpack.c.bf16 %v598_v46, %v597_v45  ;;  %v603_v56 = vld [vmem:[%s1853_s8 + $0x30] sm:$0xff]  ;;  %v604_v57 = vld [vmem:[%s1853_s8 + $0x38] sm:$0xff] }
  0x7e   :  { %1172 = vmatpush3.bf16.msra.mxu0 %v1171_v5  ;;  %v334_v5 = vld [vmem:[#allocation9 + $0x118] sm:$0xff]  ;;  %v1205_v28 = vpack.c.bf16 %v358_v26, %v357_v25  ;;  %v612_v7 = vld [vmem:[%s1853_s8 + $0x78] sm:$0xff] }
  0x7f   :  { %1174 = vmatprep.subr.bf16.mxu0 %v1173_v6  ;;  %v297_v6 = vld [vmem:[%s1850_s5 + $0x18] sm:$0xff]  ;;  %v605_v59 = vld [vmem:[%s1853_s8 + $0x40] sm:$0xff]  ;;  %v606_v60 = vld [vmem:[%s1853_s8 + $0x48] sm:$0xff] }
  0x80   :  { %v692_v14 = vld [vmem:[%s1855_s10 + $0x8] sm:$0xff]  ;;  %v695_v25 = vld [vmem:[%s1855_s10 + $0x20] sm:$0xff] }
  0x81   :  { %v696_v26 = vld [vmem:[%s1855_s10 + $0x28] sm:$0xff]  ;;  %v719_v45 = vld [vmem:[%s1855_s10 + $0xe0] sm:$0xff] }
  0x82   :  { %1176 = vmatpush3.bf16.msra.mxu0 %v1175_v9  ;;  %v1191_v9 = vpack.c.bf16 %v334_v5, %v333_v4  ;;  %v610_v4 = vld [vmem:[%s1853_s8 + $0x68] sm:$0xff] }
  0x83   :  { %1178 = vmatprep.subr.bf16.mxu0 %v1177_v12  ;;  %v336_v12 = vld [vmem:[#allocation9 + $0x128] sm:$0xff]  ;;  %v720_v46 = vld [vmem:[%s1855_s10 + $0xe8] sm:$0xff] }
  0x84   :  { %v1195_v15 = vpack.c.bf16 %v336_v12, %v335_v11  ;;  %v707_v11 = vld [vmem:[%s1855_s10 + $0x80] sm:$0xff] }
  0x85   :  { %v691_v12 = vld [vmem:[%s1855_s10] sm:$0xff] }
  0x86   :  { %1180 = vmatpush3.bf16.msra.mxu0 %v1179_v18  ;;  %v338_v18 = vld [vmem:[#allocation9 + $0x138] sm:$0xff] }
  0x87   :  { %1182 = vmatprep.subr.bf16.mxu0 %v1181_v22  ;;  %v1199_v21 = vpack.c.bf16 %v338_v18, %v337_v17  ;;  %v1201_v22 = vpack.c.bf16 %v356_v20, %v355_v19  ;;  %v1267_v17 = vpack.c.bf16 %v692_v14, %v691_v12  ;;  %v693_v19 = vld [vmem:[%s1855_s10 + $0x10] sm:$0xff]  ;;  %v694_v20 = vld [vmem:[%s1855_s10 + $0x18] sm:$0xff] }
  0x8a   :  { %1184 = vmatpush3.bf16.msra.mxu0 %v1183_v27  ;;  %v1203_v27 = vpack.c.bf16 %v340_v24, %v339_v23  ;;  %v1271_v23 = vpack.c.bf16 %v694_v20, %v693_v19  ;;  %v800_v20 = vld [vmem:[%s1857_s12] sm:$0xff] }
  0x8b   :  { %1217 = vmatprep.subr.bf16.mxu0 %v1432_v0 }
  0x8d   :  { %451 = vmatmul.mubr.f32.vlgmr.msra.gmra.mrb[2].mxu0 %v294_v29  ;;  %v341_v29 = vld [vmem:[#allocation9 + $0x150] sm:$0xff] }
  0x8e   :  { %1079 = vmatprep.mubr.msk.f32.mxu0 %vm1433_vm0, %v1434_v1  ;;  %1219 = vmatpush3.bf16.msra.mxu0 %v1218_v32  ;;  %v360_v32 = vld [vmem:[#allocation9 + $0x1e8] sm:$0xff]  ;;  %v1207_v33 = vpack.c.bf16 %v342_v30, %v341_v29  ;;  %v1275_v29 = vpack.c.bf16 %v696_v26, %v695_v25 }
  0x8f   :  { %1220 = vmatprep.subr.bf16.mxu0 %v1432_v0  ;;  %v1209_v34 = vpack.c.bf16 %v360_v32, %v359_v31  ;;  %v697_v31 = vld [vmem:[%s1855_s10 + $0x30] sm:$0xff]  ;;  %v698_v32 = vld [vmem:[%s1855_s10 + $0x38] sm:$0xff] }
  0x92   :  { %1222 = vmatpush3.bf16.msra.mxu0 %v1221_v35  ;;  %v343_v35 = vld [vmem:[#allocation9 + $0x160] sm:$0xff] }
  0x93   :  { %1223 = vmatprep.subr.bf16.mxu0 %v1432_v0  ;;  %v1211_v39 = vpack.c.bf16 %v344_v36, %v343_v35  ;;  %v1279_v35 = vpack.c.bf16 %v698_v32, %v697_v31 }
  0x96   :  { %1225 = vmatpush3.bf16.msra.mxu0 %v1224_v38  ;;  %v362_v38 = vld [vmem:[#allocation9 + $0x1f8] sm:$0xff] }
  0x97   :  { %1226 = vmatprep.subr.bf16.mxu0 %v1432_v0  ;;  %v1213_v40 = vpack.c.bf16 %v362_v38, %v361_v37  ;;  %v699_v37 = vld [vmem:[%s1855_s10 + $0x40] sm:$0xff]  ;;  %v700_v38 = vld [vmem:[%s1855_s10 + $0x48] sm:$0xff] }
  0x9a   :  { %1228 = vmatpush3.bf16.msra.mxu0 %v1227_v41  ;;  %v345_v41 = vld [vmem:[#allocation9 + $0x170] sm:$0xff] }
  0x9b   :  { %1229 = vmatprep.subr.bf16.mxu0 %v1432_v0  ;;  %v1215_v43 = vpack.c.bf16 %v346_v42, %v345_v41  ;;  %v1283_v41 = vpack.c.bf16 %v700_v38, %v699_v37 }
  0x9e   :  { %1231 = vmatpush3.bf16.msra.mxu0 %v1230_v44  ;;  %v296_v44 = vld [vmem:[%s1850_s5 + $0x10] sm:$0xff] }
  0x9f   :  { %1232 = vmatprep.subr.bf16.mxu0 %v1432_v0 }
  0xa2   :  { %1234 = vmatpush3.bf16.msra.mxu0 %v1233_v47 }
  0xa3   :  { %1235 = vmatprep.subr.bf16.mxu0 %v1432_v0 }
  0xa6   :  { %1237 = vmatpush3.bf16.msra.mxu0 %v1236_v50  ;;  %v600_v50 = vld [vmem:[%s1853_s8 + $0x18] sm:$0xff] }
  0xa7   :  { %1238 = vmatprep.subr.bf16.mxu0 %v1432_v0  ;;  %v1245_v52 = vpack.c.bf16 %v600_v50, %v599_v49  ;;  %v703_v49 = vld [vmem:[%s1855_s10 + $0x60] sm:$0xff]  ;;  %v704_v50 = vld [vmem:[%s1855_s10 + $0x68] sm:$0xff] }
  0xaa   :  { %1240 = vmatpush3.bf16.msra.mxu0 %v1239_v53  ;;  %v601_v53 = vld [vmem:[%s1853_s8 + $0x20] sm:$0xff] }
  0xad   :  { %1080 = vmatmul.mubr.f32.vlgmr.msra.gmra.mrb[4].mxu0 %v298_v54  ;;  %v602_v54 = vld [vmem:[%s1853_s8 + $0x28] sm:$0xff] }
 0x140   :  { %v195_v58 = vpop.f32.mrb[0].mxu0 }
 0x141   :  { %v196_v61 = vadd.f32 %v822_v55, %v195_v58  ;;  %v1011_v62 = vpop.f32.mrb[1].mxu0  ;;  %v1248_v55 = vpack.c.bf16 %v602_v54, %v601_v53  ;;  %v1251_v58 = vpack.c.bf16 %v604_v57, %v603_v56  ;;  %v825_v54 = vld [vmem:[%s1852_s7] ss:$0 sm:$0xff] }
 0x142   :  { %v607_v62 = vld [vmem:[%s1853_s8 + $0x50] sm:$0xff] }
 0x143   :  { %v199_v2 = vmax.f32 %v196_v61, 0.0  ;;  %v1254_v61 = vpack.c.bf16 %v606_v60, %v605_v59 }
 0x145   :  { %1045 = vmatmul.mubr.f32.vlgmr.msra.gmra.mrb[0].mxu1 %v199_v2 }
 0x146   :  { %1188 = vmatpush3.bf16.msra.mxu1 %v1187_v63  ;;  %520 = vmatprep.mubr.f32.mxu1 %v297_v6  ;;  %v608_v63 = vld [vmem:[%s1853_s8 + $0x58] sm:$0xff]  ;;  %v611_v6 = vld [vmem:[%s1853_s8 + $0x70] sm:$0xff] }
 0x147   :  { %1190 = vmatprep.subr.bf16.mxu1 %v1189_v3  ;;  %v1257_v2 = vpack.c.bf16 %v608_v63, %v607_v62  ;;  %v609_v3 = vld [vmem:[%s1853_s8 + $0x60] sm:$0xff]  ;;  %v721_v62 = vld [vmem:[%s1855_s10 + $0xf0] sm:$0xff]  ;;  %v722_v63 = vld [vmem:[%s1855_s10 + $0xf8] sm:$0xff] }
 0x148   :  { %v1260_v5 = vpack.c.bf16 %v610_v4, %v609_v3  ;;  %v705_v3 = vld [vmem:[%s1855_s10 + $0x70] sm:$0xff] }
 0x14a   :  { %1192 = vmatpush3.bf16.msra.mxu1 %v1191_v9  ;;  %v1263_v9 = vpack.c.bf16 %v612_v7, %v611_v6  ;;  %v824_v6 = vld [vmem:[#allocation7] ss:$0 sm:$0xff]  ;;  %v826_v7 = vld [vmem:[%s1854_s9] ss:$0 sm:$0xff] }
 0x14b   :  { %1194 = vmatprep.subr.bf16.mxu1 %v1193_v10 }
 0x14e   :  { %1196 = vmatpush3.bf16.msra.mxu1 %v1195_v15  ;;  %v709_v15 = vld [vmem:[%s1855_s10 + $0x90] sm:$0xff] }
 0x14f   :  { %1198 = vmatprep.subr.bf16.mxu1 %v1197_v16  ;;  %v710_v16 = vld [vmem:[%s1855_s10 + $0x98] sm:$0xff] }
 0x150   :  { %v1269_v18 = vpack.c.bf16 %v710_v16, %v709_v15  ;;  %v827_v15 = vld [vmem:[%s1856_s11] ss:$0 sm:$0xff] }
 0x152   :  { %1200 = vmatpush3.bf16.msra.mxu1 %v1199_v21  ;;  %v711_v21 = vld [vmem:[%s1855_s10 + $0xa0] sm:$0xff] }
 0x153   :  { %1202 = vmatprep.subr.bf16.mxu1 %v1201_v22  ;;  %v712_v22 = vld [vmem:[%s1855_s10 + $0xa8] sm:$0xff] }
 0x154   :  { %v1273_v24 = vpack.c.bf16 %v712_v22, %v711_v21 }
 0x156   :  { %1204 = vmatpush3.bf16.msra.mxu1 %v1203_v27  ;;  %v713_v27 = vld [vmem:[%s1855_s10 + $0xb0] sm:$0xff] }
 0x157   :  { %1206 = vmatprep.subr.bf16.mxu1 %v1205_v28  ;;  %v714_v28 = vld [vmem:[%s1855_s10 + $0xb8] sm:$0xff] }
 0x158   :  { %v1277_v30 = vpack.c.bf16 %v714_v28, %v713_v27 }
 0x15a   :  { %1208 = vmatpush3.bf16.msra.mxu1 %v1207_v33  ;;  %v715_v33 = vld [vmem:[%s1855_s10 + $0xc0] sm:$0xff] }
 0x15b   :  { %1210 = vmatprep.subr.bf16.mxu1 %v1209_v34  ;;  %v716_v34 = vld [vmem:[%s1855_s10 + $0xc8] sm:$0xff] }
 0x15c   :  { %v1281_v36 = vpack.c.bf16 %v716_v34, %v715_v33 }
 0x15e   :  { %1212 = vmatpush3.bf16.msra.mxu1 %v1211_v39  ;;  %v717_v39 = vld [vmem:[%s1855_s10 + $0xd0] sm:$0xff] }
 0x15f   :  { %1214 = vmatprep.subr.bf16.mxu1 %v1213_v40  ;;  %v718_v40 = vld [vmem:[%s1855_s10 + $0xd8] sm:$0xff] }
 0x160   :  { %v886_v47 = vpop.f32.mrb[2].mxu0  ;;  %v1285_v42 = vpack.c.bf16 %v718_v40, %v717_v39 }
 0x161   :  { %v887_v51 = vpop.f32.mrb[3].mxu0 }
 0x162   :  { %1216 = vmatpush3.bf16.msra.mxu1 %v1215_v43  ;;  %v701_v43 = vld [vmem:[%s1855_s10 + $0x50] sm:$0xff] }
 0x163   :  { %1241 = vmatprep.subr.bf16.mxu1 %v1432_v0 }
 0x165   :  { %521 = vmatmul.mubr.f32.vlgmr.msra.gmra.mrb[2].mxu1 %v296_v44  ;;  %v702_v44 = vld [vmem:[%s1855_s10 + $0x58] sm:$0xff] }
 0x166   :  { %1114 = vmatprep.mubr.msk.f32.mxu1 %vm1433_vm0, %v1434_v1  ;;  %v1682_v1 = vadd.f32 %v887_v51, %v886_v47  ;;  %1243 = vmatpush3.bf16.msra.mxu1 %v1242_v48  ;;  %v1287_v47 = vpack.c.bf16 %v702_v44, %v701_v43  ;;  %v1289_v48 = vpack.c.bf16 %v720_v46, %v719_v45 }
 0x167   :  { %1244 = vmatprep.subr.bf16.mxu1 %v1432_v0  ;;  %v1291_v51 = vpack.c.bf16 %v704_v50, %v703_v49 }
 0x168   :  { %v453_v57 = vadd.f32 %v1682_v1, %v825_v54  ;;  %v706_v1 = vld [vmem:[%s1855_s10 + $0x78] sm:$0xff] }
 0x169   :  { %v1295_v4 = vpack.c.bf16 %v706_v1, %v705_v3 }
 0x16a   :  { %1246 = vmatpush3.bf16.msra.mxu1 %v1245_v52 }
 0x16b   :  { %1247 = vmatprep.subr.bf16.mxu1 %v1432_v0 }
 0x16e   :  { %1249 = vmatpush3.bf16.msra.mxu1 %v1248_v55 }
 0x16f   :  { %1250 = vmatprep.subr.bf16.mxu1 %v1432_v0 }
 0x172   :  { %1252 = vmatpush3.bf16.msra.mxu1 %v1251_v58 }
 0x173   :  { %1253 = vmatprep.subr.bf16.mxu1 %v1432_v0 }
 0x176   :  { %1255 = vmatpush3.bf16.msra.mxu1 %v1254_v61 }
 0x177   :  { %1256 = vmatprep.subr.bf16.mxu1 %v1432_v0 }
 0x17a   :  { %1258 = vmatpush3.bf16.msra.mxu1 %v1257_v2  ;;  %v1293_v2 = vpack.c.bf16 %v722_v63, %v721_v62 }
 0x17b   :  { %1259 = vmatprep.subr.bf16.mxu1 %v1432_v0 }
 0x17e   :  { %1261 = vmatpush3.bf16.msra.mxu1 %v1260_v5  ;;  %v802_v5 = vld [vmem:[%s1858_s13] sm:$0xff]  ;;  %s1436_s13 = smov 127  }
 0x17f   :  { %1262 = vmatprep.subr.bf16.mxu1 %v1432_v0  ;;  %v708_v0 = vld [vmem:[%s1855_s10 + $0x88] sm:$0xff]  ;;  %804 = vrot.lane.b32.xlu0 %v802_v5, %s1435_s25 }
 0x180   :  { %v1727_v8 = vpop.f32.mrb[4].mxu0  ;;  %v1265_v13 = vpack.c.bf16 %v708_v0, %v707_v11 }
 0x181   :  { %v1081_v10 = vpop.f32.mrb[5].mxu0 }
 0x182   :  { %1264 = vmatpush3.bf16.msra.mxu1 %v1263_v9  ;;  %1266 = vmatprep.subr.bf16.mxu0 %v1265_v13 }
 0x183   :  { %1268 = vmatpush3.bf16.msra.mxu0 %v1267_v17 }
 0x184   :  { %1270 = vmatprep.subr.bf16.mxu0 %v1269_v18 }
 0x187   :  { %1272 = vmatpush3.bf16.msra.mxu0 %v1271_v23 }
 0x188   :  { %1274 = vmatprep.subr.bf16.mxu0 %v1273_v24 }
 0x18b   :  { %1276 = vmatpush3.bf16.msra.mxu0 %v1275_v29 }
 0x18c   :  { %1278 = vmatprep.subr.bf16.mxu0 %v1277_v30 }
 0x18f   :  { %1280 = vmatpush3.bf16.msra.mxu0 %v1279_v35 }
 0x190   :  { %1282 = vmatprep.subr.bf16.mxu0 %v1281_v36 }
 0x193   :  { %1284 = vmatpush3.bf16.msra.mxu0 %v1283_v41 }
 0x194   :  { %1286 = vmatprep.subr.bf16.mxu0 %v1285_v42 }
 0x197   :  { %1288 = vmatpush3.bf16.msra.mxu0 %v1287_v47 }
 0x198   :  { %1290 = vmatprep.subr.bf16.mxu0 %v1289_v48 }
 0x19b   :  { %1292 = vmatpush3.bf16.msra.mxu0 %v1291_v51 }
 0x19c   :  { %1294 = vmatprep.subr.bf16.mxu0 %v1293_v2 }
 0x19f   :  { %1296 = vmatpush3.bf16.msra.mxu0 %v1295_v4 }
 0x1f1   :  { %v805_v17 = vpop.permute.xlu0 %804 }
 0x218   :  { %v289_v52 = vpop.f32.mrb[0].mxu1 }
 0x219   :  { %v1046_v53 = vpop.f32.mrb[1].mxu1 }
 0x238   :  { %v921_v55 = vpop.f32.mrb[2].mxu1 }
 0x239   :  { %v922_v56 = vpop.f32.mrb[3].mxu1 }
 0x23a   :  { %v923_v58 = vadd.f32 %v922_v56, %v921_v55 }
 0x23c   :  { %v523_v59 = vadd.f32 %v923_v58, %v453_v57 }
 0x23e   :  { %v593_v60 = vadd.f32 %v1727_v8, %v523_v59  ;;  %v290_v8 = vadd.f32 %v824_v6, %v289_v52 }
 0x240   :  { %v596_v61 = vmax.f32 %v593_v60, 0.0  ;;  %v293_v12 = vmax.f32 %v290_v8, 0.0 }
 0x242   :  { %1115 = vmatmul.mubr.f32.vlgmr.msra.gmra.mrb[4].mxu1 %v596_v61 }
 0x315   :  { %v686_v9 = vpop.f32.mrb[4].mxu1 }
 0x316   :  { %v687_v10 = vadd.f32 %v826_v7, %v686_v9  ;;  %v1116_v11 = vpop.f32.mrb[5].mxu1 }
 0x318   :  { %v690_v0 = vmax.f32 %v687_v10, 0.0 }
 0x31a   :  { %794 = vmatprep.mubr.f32.mxu0 %v690_v0 }
 0x31b   :  { %795 = vmatmul.mubr.f32.vlgmr.msra.gmra.mrb[6].mxu0 %v293_v12 }
 0x3ee   :  { %v990_v13 = vpop.f32.mrb[6].mxu0 }
 0x3ef   :  { %v991_v14 = vpop.f32.mrb[7].mxu0 }
 0x3f0   :  { %v992_v16 = vadd.f32 %v991_v14, %v990_v13 }
 0x3f2   :  { %v797_v18 = vadd.f32 %v992_v16, %v827_v15 }
 0x3f4   :  { %v807_v19 = vmul.f32 %v805_v17, %v797_v18  ;;  %v801_v21 = vmul.f32 %v800_v20, %v797_v18 }
 0x3f6   :  { %809 = vrot.lane.b32.xlu0 %v807_v19, %s1436_s13 }
 0x468   :  { %v810_v22 = vpop.permute.xlu0 %809 }
 0x469   :  { %v812_v23 = vadd.f32 %v810_v22, %v801_v21 }
 0x46b   :  { %814 = vst.msk [vmem:[%s1859_s14] sm:$0xff] %vm813_vm2, %v812_v23 }
 0x46c   :  { %819 = vsyncpa [#allocation3], 1 }
 0x46d   :  { %820 = vsyncpa [#allocation5], 1 }
 0x46e   :  { %821 = vsyncpa [#allocation8], 1 }

</bundles_post_ra>
